<compile_context>
chip_gen: v6e
topology: v6e:2x2x1
jax: 0.10.0
libtpu: 0.0.40
codegen_flags: <defaults>
</compile_context>

<pallas_src>
import jax
import jax.numpy as jnp
from jax.experimental import pallas as pl
from jax.experimental.pallas import tpu as pltpu

_LANES = 128
_MAX_BLOCK_BYTES = 4 << 20          # 4 MiB per block (8192 f32 rows)


def _sublane_align(dtype) -> int:
    # Native sublane packing: 8 for 4-byte, 16 for 2-byte, 32 for 1-byte types.
    itemsize = jnp.dtype(dtype).itemsize
    return max(8, 32 // itemsize)


def _vmem_capacity_bytes() -> int:
    try:
        return int(pltpu.get_tpu_info().vmem_capacity_bytes)
    except Exception:
        return 64 << 20             # conservative fallback (v7x per-TC)


def _smooth_heaviside_kernel(k, m):
    # k, m baked as Python constants (module hyper-parameters).
    # TODO(synk): if k/m ever vary at runtime, pass them via an SMEM BlockSpec
    # instead of closing over floats to avoid a recompile per (k, m).
    half_k = 0.5 * float(k)
    bias = 1.0 - float(m)

    def kernel(x_ref, o_ref):
        # Compute in f32 regardless of storage dtype (v5e has no bf16 VPU/EUP);
        # HBM traffic stays in the narrow input/output dtype.
        x = x_ref[...].astype(jnp.float32)
        o_ref[...] = (jnp.tanh(half_k * x) + bias).astype(o_ref.dtype)

    return kernel


def smooth_heaviside(x, k, m):
    """Elementwise Smooth_heaviside. Accepts any shape / float dtype."""
    orig_shape = x.shape
    dtype = x.dtype
    n = x.size
    itemsize = jnp.dtype(dtype).itemsize
    align = _sublane_align(dtype)

    rows = pl.cdiv(n, _LANES)

    # Common path: n % 128 == 0 -> pure (zero-copy) reshape, no HBM round trip.
    # Ragged tail: pad only up to the next 128 multiple.
    ragged = (n % _LANES) != 0
    x_flat = jnp.ravel(x)
    if ragged:
        x_flat = jnp.pad(x_flat, (0, rows * _LANES - n))
    x2d = x_flat.reshape(rows, _LANES)

    # ---- tile sizing -------------------------------------------------------
    vmem_cap = _vmem_capacity_bytes()
    max_block_bytes = min(_MAX_BLOCK_BYTES, vmem_cap // 16)
    max_rows = max(align, (max_block_bytes // (_LANES * itemsize)) // align * align)

    if rows <= align:
        # Tiny input: one block equal to the full array (allowed even if
        # rows < 8 because block_shape == array shape).
        tile_rows = rows
    elif rows <= 2 * max_rows:
        # Fits in <= 2 big blocks: split in two so both v7x TensorCores work.
        tile_rows = min(max_rows, pl.cdiv(pl.cdiv(rows, 2), align) * align)
    else:
        tile_rows = max_rows

    grid = (pl.cdiv(rows, tile_rows),)
    block_bytes = tile_rows * _LANES * itemsize
    # in + out, double buffered, plus headroom for internal scratch.
    vmem_limit = 4 * block_bytes + (8 << 20)

    out2d = pl.pallas_call(
        _smooth_heaviside_kernel(k, m),
        out_shape=jax.ShapeDtypeStruct((rows, _LANES), dtype),
        grid_spec=pltpu.PrefetchScalarGridSpec(
            num_scalar_prefetch=0,
            grid=grid,
            in_specs=[pl.BlockSpec((tile_rows, _LANES), lambda i: (i, 0))],
            out_specs=pl.BlockSpec((tile_rows, _LANES), lambda i: (i, 0)),
        ),
        compiler_params=pltpu.CompilerParams(
            dimension_semantics=("parallel",),
            vmem_limit_bytes=vmem_limit),
        cost_estimate=pl.CostEstimate(
            flops=2 * n,
            transcendentals=n,
            bytes_accessed=2 * rows * _LANES * itemsize),
    )(x2d)

    out = out2d.reshape(-1)
    if ragged:
        out = out[:n]
    return out.reshape(orig_shape)


def smooth_heaviside_ref(x, k, m):
    # Literal translation of the PyTorch forward (in f32).
    xf = x.astype(jnp.float32)
    s = jax.nn.sigmoid(k * xf)
    x1 = 2.0 - 1.0 / (s / m)
    return (x1 * s).astype(x.dtype)


if __name__ == "__main__":
    key = jax.random.PRNGKey(0)
    # "Module parameters" (k, m given at __init__ in PyTorch).
    k_param = 10.0
    m_param = 1.0

    # Shape implied by the module's typical use (NCHW activation map).
    x = jax.random.normal(key, (2, 4, 16, 16), dtype=jnp.float32)

    out = jax.block_until_ready(smooth_heaviside(x, k_param, m_param))
    ref = smooth_heaviside_ref(x, k_param, m_param)
    assert out.shape == x.shape and out.dtype == x.dtype
    assert jnp.allclose(out, ref, atol=2e-5, rtol=2e-5)

    # Ragged-tail path (n % 128 != 0).
    x2 = jax.random.normal(jax.random.PRNGKey(1), (3, 5, 7), dtype=jnp.float32)
    out2 = jax.block_until_ready(smooth_heaviside(x2, k_param, m_param))
    ref2 = smooth_heaviside_ref(x2, k_param, m_param)
    assert out2.shape == x2.shape
    assert jnp.allclose(out2, ref2, atol=2e-5, rtol=2e-5)

    print("KERNEL_OK")
</pallas_src>

<mosaic_0001>
module attributes {stable_mosaic.version = 11 : i64} {
  func.func @kernel(%arg0: i32, %arg1: memref<8x128xf32, #tpu.memory_space<vmem>>, %arg2: memref<8x128xf32, #tpu.memory_space<vmem>>) attributes {dimension_semantics = [#tpu.dimension_semantics<parallel>], iteration_bounds = array<i64: 2>, scalar_prefetch = 0 : i64, scratch_operands = 0 : i64, tpu.core_type = #tpu.core_type<tc>, window_params = [{transform_indices = @transform_0, window_bounds = array<i64: 8, 128>}, {transform_indices = @transform_1, window_bounds = array<i64: 8, 128>}]} {
    %c0 = arith.constant 0 : index
    %c0_0 = arith.constant 0 : index
    %0 = vector.load %arg1[%c0, %c0_0] : memref<8x128xf32, #tpu.memory_space<vmem>>, vector<8x128xf32>
    %cst = arith.constant 5.000000e+00 : f32
    %1 = vector.broadcast %cst : f32 to vector<8x128xf32>
    %2 = arith.mulf %1, %0 : vector<8x128xf32>
    %3 = math.tanh %2 : vector<8x128xf32>
    %cst_1 = arith.constant 0.000000e+00 : f32
    %4 = vector.broadcast %cst_1 : f32 to vector<8x128xf32>
    %5 = arith.addf %3, %4 : vector<8x128xf32>
    %c0_2 = arith.constant 0 : index
    %c0_3 = arith.constant 0 : index
    %6 = vector.load %arg2[%c0_2, %c0_3] : memref<8x128xf32, #tpu.memory_space<vmem>>, vector<8x128xf32>
    tpu.vector_store %arg2[%c0_2, %c0_3], %5 {strides = array<i32>} : memref<8x128xf32, #tpu.memory_space<vmem>>, vector<8x128xf32>,
    return
  }
  func.func @transform_0(%arg0: i32) -> (i32, i32) {
    %c0_i32 = arith.constant 0 : i32
    %c0_i32_0 = arith.constant 0 : i32
    return %arg0, %c0_i32 : i32, i32
  }
  func.func @transform_1(%arg0: i32) -> (i32, i32) {
    %c0_i32 = arith.constant 0 : i32
    %c0_i32_0 = arith.constant 0 : i32
    return %arg0, %c0_i32 : i32, i32
  }
}

</mosaic_0001>

<bundles_post_ra>
// kernel: tpu_custom_call.1
= control target key start
LH: loop header
LB: loop body
LE: loop exit
PB: predicated region body
PF: predicated region fallthrough
CT: control target
= control target key end

     0   :  { %6 = vsyncpa [#allocation3], 0  ;;  %s534_s0 = inlined_call_operand.hbm [shape: f32[16,128], index: 0, kind: input, shape index: {}]   ;;  %s535_s1 = inlined_call_operand.hbm [shape: f32[16,128], index: 1, kind: output, shape index: {}]  }
   0x1   :  { %8 = vsyncpa [#allocation3 + $0x1], 0 }
   0x2   :  { %9 = vsyncpa [#allocation4], 0 }
   0x3   :  { %11 = vsyncpa [#allocation4 + $0x1], 0  ;;  %s387_s6 = smov 0   ;;  %s389_s7 = smov 0  }
   0x4   :  { %s391_s8 = smov 0   ;;  %s393_s9 = smov 0  }
   0x5 LB: > { %s408_s10 = sadd.s32 4294967295, %s373_s9   ;;  %s221_s11 = sadd.s32 4294967294, %s373_s9   ;;  %s373_s9 = sphi %s393_s9, %s552_s9   ;;  %s369_s8 = sphi %s391_s8, %s551_s8   ;;  %s365_s7 = sphi %s389_s7, %s550_s7   ;;  %s361_s6 = sphi %s387_s6, %s549_s6  }
   0x6   : > { %s412_s12 = sadd.s32 1, %s373_s9   ;;  %s24_s13 = sadd.s32 1, %s369_s8 }
   0x7   : > { %s21_s14 = ssub.s32 %s373_s9, %s412_s12  ;;  %p31_p0 = scmp.ne.s32.totalorder %s369_s8, %s365_s7 }
   0x8   : > { %p22_p1 = scmp.eq.s32.totalorder %s21_s14, 0  ;;  %p32_p2 = scmp.eq.s32.totalorder %s373_s9, 0 }
   0x9   : > { %p37_p3 = scmp.ne.s32.totalorder %s365_s7, %s361_s6  ;;  %p38_p4 = scmp.eq.s32.totalorder %s408_s10, 0 }
   0xa   : > { %s424_s15 = scalar_select %p22_p1, %s369_s8, %s24_s13  }
   0xb   : > { %p426_p5 = por %p32_p2, %p31_p0  ;;  %p430_p6 = por %p38_p4, %p37_p3 }
   0xc   : > { %p61_p7 = scmp.eq.s32.totalorder %s408_s10, 1  ;;  %p67_p8 = scmp.eq.s32.totalorder %s221_s11, 1 }
   0xd   : > { %s539_s17 = scalar_select %p430_p6, 1, 0 }
   0xe   : > { %p245_p10 = scmp.lt.s32.totalorder %s373_s9, 2  ;;  %p437_p11 = por %p61_p7, %p31_p0 }
   0xf   : > { %p441_p12 = por %p67_p8, %p37_p3  ;;  %s87_s20 = sand.u32 1, %s369_s8  }
  0x10   : > { %s540_s18 = scalar_select %p437_p11, 1, 0 }
  0x11   : > { %s541_s19 = scalar_select %p441_p12, 1, 0 }
  0x12   : > { %s225_s21 = sshll.u32 %s373_s9, 7  ;;  %s224_s22 = sshll.u32 %s87_s20, 3 }
  0x13   : > { %s450_s25 = scalar_lea.hbm %s534_s0, %s225_s21  ;;  %s91_s26 = scalar_lea.vmem [#allocation2], %s224_s22 }
  0x14   : > { %s98_s27 = sshll.u32 %s91_s26, 4  ;;  %p454_p13 = pnand %p245_p10, %p426_p5  ;;  %s458_s27 = int_to_ptr.vmem [resolvable:$true] %s98_s27 }
  0x15   : > { %s88_s29 = scalar_lea.sflag [#allocation3], %s87_s20  ;;  %s281_s30 = scalar_lea.hbm %s450_s25, 128 }
  0x16   : > { %p282_p2 = scmp.ne.s32.totalorder %s450_s25, %s281_s30  ;;  %p283_p3 = pneg %p454_p13 }
  0x17   : > { %s286_s4 = scalar_lea.hbm %s534_s0, 256  ;;  %p287_p5 = scmp.lt.s32.totalorder %s450_s25, %s534_s0 }
  0x18   : > { %p284_p4 = pnand %p283_p3, %p282_p2  ;;  %p288_p8 = scmp.lt.s32.totalorder %s286_s4, %s281_s30 }
  0x1a   : > { %p285_p7 = pneg %p284_p4  ;;  %p289_p10 = por %p288_p8, %p287_p5 }
  0x1c   : > { %p290_p9 = pnand %p289_p10, %p285_p7 }
  0x1e   : > { %293 = shalt.err (!%p290_p9)
}
  0x1f   : > { %s294_s13 = scalar_lea.vmem %s458_s27, 128  ;;  %s375_s14 = smov [#allocation2]  }
  0x20   : > { %p295_p0 = scmp.ne.s32.totalorder %s458_s27, %s294_s13  ;;  %s299_s16 = sshll.u32 %s375_s14, 4  ;;  %s300_s16 = int_to_ptr.vmem [resolvable:$false] %s299_s16 }
  0x21   : > { %s301_s20 = scalar_lea.vmem %s300_s16, 256  ;;  %p302_p4 = scmp.lt.s32.totalorder %s458_s27, %s300_s16 }
  0x22   : > { %p297_p1 = pnand %p295_p0, %p283_p3  ;;  %p303_p12 = scmp.lt.s32.totalorder %s301_s20, %s294_s13 }
  0x24   : > { %p298_p2 = pneg %p297_p1  ;;  %p304_p11 = por %p303_p12, %p302_p4 }
  0x26   : > { %p305_p6 = pnand %p304_p11, %p298_p2 }
  0x28   : > { %308 = shalt.err (!%p305_p6)
}
  0x29   : > { %240 = dma.hbm_to_vmem [thread:$0]  (!%p454_p13), %s450_s25, 128, %s458_s27, %s88_s29  }
  0x2a   : > { %p543_p9 = scmp.lt.s32.totalorder %s373_s9, 3  ;;  %p544_p7 = scmp.ge.s32.totalorder %s373_s9, 1 }
  0x2c   : > { %p104_p0 = pnand %p544_p7, %p543_p9 }
  0x2d   : > { %s485_s21 = sand.u32 (!%p104_p0), 1, %s365_s7   ;;  %p545_p6 = scmp.ne.s32.totalorder (!%p104_p0), %s539_s17, 0 }
  0x2e   : > { %107 = sbr.rel (%p104_p0) target bundleno = 82 (0x52), region = 24  ;;  %s227_s22 = sshll.u32 (!%p104_p0), %s485_s21, 3 }
  0x2f   : > { %s110_s23 = scalar_lea.sflag (!%p104_p0), [#allocation3], %s485_s21  ;;  %s113_s24 = scalar_lea.vmem (!%p104_p0), [#allocation2], %s227_s22 }
  0x33   : > { %352 = dma.done.wait (%p545_p6), %s110_s23, 128  }
  0x34   : > { %354 = vsyncadd (%p545_p6), %s110_s23, 4294967168  ;;  %v132_v0 = vld [vmem:[%s113_s24] sm:$0xff]  ;;  %s131_s25 = scalar_lea.vmem [#allocation5], %s227_s22  ;;  %s230_s27 = sshll.u32 %s408_s10, 7 }
  0x35   : > { %v133_v1 = vmul.f32 5.0, %v132_v0  ;;  %s151_s26 = sshll.u32 %s131_s25, 4  ;;  %s149_s30 = scalar_lea.hbm %s535_s1, %s230_s27  ;;  %s494_s26 = int_to_ptr.vmem [resolvable:$true] %s151_s26 }
  0x36   : > { %s138_s17 = scalar_lea.sflag [#allocation4], %s485_s21  ;;  %s309_s2 = scalar_lea.vmem %s494_s26, 128 }
  0x37   : > { %279 = vtanh.f32 %v133_v1  ;;  %p310_p11 = scmp.ne.s32.totalorder %s494_s26, %s309_s2  ;;  %p546_p12 = scmp.ne.s32.totalorder %s540_s18, 0 }
  0x38   : > { %s376_s3 = smov [#allocation5]  }
  0x39   : > { %p311_p13 = pnand %p310_p11, %p546_p12  ;;  %s313_s4 = sshll.u32 %s376_s3, 4  ;;  %s314_s4 = int_to_ptr.vmem [resolvable:$false] %s313_s4 }
  0x3a   : > { %s315_s10 = scalar_lea.vmem %s314_s4, 256  ;;  %p316_p3 = scmp.lt.s32.totalorder %s494_s26, %s314_s4 }
  0x3b   : > { %p312_p1 = pneg %p311_p13  ;;  %p317_p5 = scmp.lt.s32.totalorder %s315_s10, %s309_s2 }
  0x3d   : > { %p318_p8 = por %p317_p5, %p316_p3 }
  0x3f   : > { %p319_p10 = pnand %p318_p8, %p312_p1 }
  0x44   : > { %v280_v2 = vpop.eup %279 }
  0x45   : > { %136 = vst [vmem:[%s131_s25] sm:$0xff] %v280_v2 }
  0x46   : > { %322 = shalt.err (!%p319_p10)
}
  0x47   : > { %s323_s5 = scalar_lea.hbm %s149_s30, 128  ;;  %s327_s14 = scalar_lea.hbm %s535_s1, 256 }
  0x48   : > { %p324_p2 = scmp.ne.s32.totalorder %s149_s30, %s323_s5  ;;  %p328_p7 = scmp.lt.s32.totalorder %s149_s30, %s535_s1 }
  0x49   : > { %p329_p0 = scmp.lt.s32.totalorder %s327_s14, %s323_s5 }
  0x4a   : > { %p325_p4 = pnand %p324_p2, %p546_p12 }
  0x4b   : > { %p330_p6 = por %p329_p0, %p328_p7 }
  0x4c   : > { %p326_p9 = pneg %p325_p4 }
  0x4e   : > { %p331_p11 = pnand %p330_p6, %p326_p9 }
  0x50   : > { %334 = shalt.err (!%p331_p11)
}
  0x51   : > { %235 = dma.vmem_to_hbm [thread:$0]  (%p546_p12), %s494_s26, 128, %s149_s30, %s138_s17  }
  0x52 PF: > { %s163_s21 = sand.u32 1, %s361_s6   ;;  %p547_p13 = scmp.ne.s32.totalorder %s541_s19, 0 }
  0x53   : > { %p548_p1 = scmp.ge.s32.totalorder %s373_s9, 2  ;;  %s164_s22 = scalar_lea.sflag [#allocation4], %s163_s21 }
  0x55   : > { %p242_p3 = pnand %p548_p1, %p547_p13 }
  0x57   : > { %p243_p5 = pneg %p242_p3 }
  0x59   : > { %356 = dma.done.wait (%p243_p5), %s164_s22, 128  }
  0x5a   : > { %358 = vsyncadd (%p243_p5), %s164_s22, 4294967168  ;;  %p14_p8 = scmp.ge.s32.totalorder %s412_s12, 4   ;;  %s549_s6 = smov %s365_s7 }
  0x5b   : > { %s550_s7 = smov %s369_s8  ;;  %s551_s8 = smov %s424_s15 }
  0x5c   : > { %s552_s9 = smov %s412_s12  ;;  %16 = sbr.rel (!%p14_p8) target bundleno = 5 (0x5), region = 69 }
  0x61   :  { %169 = vsyncpa [#allocation3], 1 }
  0x62   :  { %171 = vsyncpa [#allocation3 + $0x1], 1 }
  0x63   :  { %172 = vsyncpa [#allocation4], 1 }
  0x64   :  { %174 = vsyncpa [#allocation4 + $0x1], 1 }

</bundles_post_ra>
